<compile_context>
chip_gen: v7x
topology: tpu7x:2x2x1
jax: 0.10.0
libtpu: 0.0.40
codegen_flags: <defaults>
</compile_context>

<pallas_src>
import jax
import jax.numpy as jnp
from jax.experimental import pallas as pl
from jax.experimental.pallas import tpu as pltpu


def _conv_bn_elu_down_kernel(x_ref, pool_ref, w_ref, bias_ref, o_ref):
    """One batch chunk per grid step.

    x_ref:    (Bt, C_in, L)    input slab, L on lanes
    pool_ref: (L, T+2)         {0,1} pool matrix incl. conv zero padding (bf16)
    w_ref:    (C_out, 3*C_in)  conv weight * 0.5 (avg pool) * BN scale (bf16)
    bias_ref: (C_out, 1)       folded BN bias = beta - mean * scale (f32)
    o_ref:    (Bt, C_out, T)   output slab, T = L // 2 on lanes
    """
    bt, c_in, length = x_ref.shape
    t = pool_ref.shape[1] - 2

    # Fused AvgPool1d(2,2) (the 0.5 is folded into the weight) + conv zero
    # padding as ONE MXU matmul over the whole batch chunk.
    xf = x_ref[...].reshape(bt * c_in, length).astype(jnp.bfloat16)
    pooled = jnp.dot(xf, pool_ref[...], preferred_element_type=jnp.float32)
    pooled = pooled.astype(jnp.bfloat16)          # sums of two bf16 values

    for b in range(bt):                           # unrolled at trace time
        rows = pooled[b * c_in:(b + 1) * c_in]    # (C_in, T+2), zero-padded ends
        # Taps k=0/1/2 of the kernel_size=3 conv are lane-shifted views of the
        # padded pooled slab; stacking them makes the conv ONE matmul with
        # contraction K = 3*C_in instead of three K=C_in micro-matmuls.
        z = jnp.concatenate(
            [rows[:, 0:t], rows[:, 1:t + 1], rows[:, 2:t + 2]], axis=0)
        acc = jnp.dot(w_ref[...], z, preferred_element_type=jnp.float32)
        y = acc + bias_ref[...]                   # folded BN (scale lives in w)
        # ELU(alpha=1). expm1 has no guaranteed Mosaic lowering; exp(min(y,0))-1
        # matches expm1 to within ~1.2e-7 absolute, same single EUP exp.
        y = jnp.where(y > 0.0, y, jnp.exp(jnp.minimum(y, 0.0)) - 1.0)
        o_ref[b] = y.astype(o_ref.dtype)


def _pick_batch_chunk(batch, c_in, length):
    """How many batch elements to fold into one grid step.

    Fatten each step (per-step overhead ~0.35us), but keep >=2 grid steps when
    the batch allows so the v7x 'parallel' axis feeds both TensorCores, and cap
    the per-step x block so double buffering stays well inside v7x's 64 MiB.
    """
    budget = 4 << 20                              # bytes for one x block
    best = 1
    for bt in range(1, batch + 1):
        if batch % bt:
            continue
        if bt * c_in * length * 4 > budget:
            break
        if batch > 1 and batch // bt < 2:
            continue
        best = bt
    return best


def conv_bn_act_down(x, conv_w, gamma, beta, running_mean, running_var, *, eps=1e-5):
    """Fused ConvBNactDown forward (eval mode) for the module's default config.

    x: (B, C_in, L) float32 with L even; conv_w: (C_out, C_in, 3).
    """
    batch, c_in, length = x.shape
    assert length % 2 == 0, "AvgPool1d(kernel=2, stride=2) needs an even length"
    t = length // 2
    c_out, c_in_w, ksize = conv_w.shape
    assert c_in_w == c_in and ksize == 3, "kernel implements kernel_size=3, groups=1"
    # TODO(synk): groups>1, other kernel_size/stride, and training-mode (batch
    # statistics) BatchNorm are not implemented; this is eval-mode forward only.

    # ---- constant operands, built once in the wrapper (VMEM-resident) ----
    # {0,1} pooling matrix with the conv's zero padding baked in: columns 0 and
    # T+1 are zero, column 1+t selects x[2t] and x[2t+1].
    l_idx = jnp.arange(length)[:, None]
    t_idx = jnp.arange(t)[None, :]
    pool_core = (l_idx == 2 * t_idx) | (l_idx == 2 * t_idx + 1)
    pool = jnp.pad(pool_core, ((0, 0), (1, 1))).astype(jnp.bfloat16)     # (L, T+2)
    # TODO(synk): for very long sequences (L >~ 8192) this O(L^2) operand should
    # be replaced by T-tiling with a 2-sample halo (or roll-based pooling) to
    # stay inside v7x's 64 MiB VMEM.

    # Conv weight reshaped to (C_out, 3*C_in) with the avg-pool 0.5 and the
    # BatchNorm scale folded in; only the bias add stays in-kernel.
    inv_std = 1.0 / jnp.sqrt(running_var.astype(jnp.float32) + eps)
    scale = gamma.astype(jnp.float32) * inv_std                          # (C_out,)
    w_kc = jnp.transpose(conv_w, (0, 2, 1)).reshape(c_out, 3 * c_in)     # [o, k*C_in+c]
    w_folded = (0.5 * w_kc * scale[:, None]).astype(jnp.bfloat16)
    bias = (beta.astype(jnp.float32)
            - running_mean.astype(jnp.float32) * scale).reshape(c_out, 1)

    bt = _pick_batch_chunk(batch, c_in, length)
    grid = (batch // bt,)

    # VMEM budget from actual block sizes (inputs/outputs double-buffered) plus
    # headroom for compiler scratch; capped below v7x's 64 MiB physical VMEM.
    x_bytes = bt * c_in * length * x.dtype.itemsize
    o_bytes = bt * c_out * t * x.dtype.itemsize
    const_bytes = pool.size * 2 + w_folded.size * 2 + bias.size * 4
    vmem_limit = int(min(56 << 20, (16 << 20) + 2 * (x_bytes + o_bytes + const_bytes)))

    return pl.pallas_call(
        _conv_bn_elu_down_kernel,
        out_shape=jax.ShapeDtypeStruct((batch, c_out, t), x.dtype),
        grid=grid,
        in_specs=[
            pl.BlockSpec((bt, c_in, length), lambda i: (i, 0, 0)),   # x chunk
            pl.BlockSpec((length, t + 2), lambda i: (0, 0)),         # pool matrix (const)
            pl.BlockSpec((c_out, 3 * c_in), lambda i: (0, 0)),       # folded weight (const)
            pl.BlockSpec((c_out, 1), lambda i: (0, 0)),              # folded BN bias (const)
        ],
        out_specs=pl.BlockSpec((bt, c_out, t), lambda i: (i, 0, 0)),
        compiler_params=pltpu.CompilerParams(
            # Independent batch chunks -> megacore-shards on v7x; ~0% measured
            # effect on single-TC v5e/v6e (those win from the fatter steps,
            # constant hoisting and fused matmuls above).
            dimension_semantics=("parallel",),
            vmem_limit_bytes=vmem_limit,
        ),
    )(x, pool, w_folded, bias)


def _reference(x, conv_w, gamma, beta, running_mean, running_var, eps=1e-5):
    """Pure-JAX reference matching the PyTorch module in eval mode."""
    b, c, length = x.shape
    t = length // 2
    pooled = x.reshape(b, c, t, 2).mean(-1)                     # AvgPool1d(2, 2)
    pad = jnp.pad(pooled, ((0, 0), (0, 0), (1, 1)))             # conv padding=1
    windows = jnp.stack([pad[:, :, k:k + t] for k in range(3)], axis=-1)  # (B,C,T,3)
    y = jnp.einsum("bctk,ock->bot", windows, conv_w)            # Conv1d, no bias
    y = (y - running_mean[None, :, None]) / jnp.sqrt(running_var[None, :, None] + eps)
    y = y * gamma[None, :, None] + beta[None, :, None]          # BatchNorm1d (eval)
    return jnp.where(y > 0.0, y, jnp.expm1(y))                  # ELU(alpha=1)


if __name__ == "__main__":
    key = jax.random.PRNGKey(0)
    kx, kw, kg, kb, km, kv = jax.random.split(key, 6)
    B, C_IN, C_OUT, L = 2, 4, 8, 32                             # pooled length T = 16
    EPS = 1e-5

    # x on a coarse dyadic grid so it (and the 2-sample pooled sums) are exact
    # in bf16 on the MXU path.
    x = jnp.round(jax.random.normal(kx, (B, C_IN, L), dtype=jnp.float32) * 8.0) / 8.0

    gamma = 1.0 + 0.25 * jax.random.normal(kg, (C_OUT,), dtype=jnp.float32)
    beta = 0.25 * jax.random.normal(kb, (C_OUT,), dtype=jnp.float32)
    running_mean = 0.25 * jax.random.normal(km, (C_OUT,), dtype=jnp.float32)
    running_var = jnp.abs(jax.random.normal(kv, (C_OUT,), dtype=jnp.float32)) + 0.5

    # Choose conv weights so the FOLDED weight (0.5 * w * bn_scale) lands exactly
    # on a coarse dyadic grid -> bf16-exact -> tight comparison vs f32 reference.
    bn_scale = gamma / jnp.sqrt(running_var + EPS)
    folded_target = jnp.round(
        jax.random.normal(kw, (C_OUT, C_IN, 3), dtype=jnp.float32) * 16.0) / 64.0
    conv_w = folded_target / (0.5 * bn_scale[:, None, None])

    out = conv_bn_act_down(x, conv_w, gamma, beta, running_mean, running_var, eps=EPS)
    jax.block_until_ready(out)

    ref = _reference(x, conv_w, gamma, beta, running_mean, running_var, EPS)
    assert out.shape == ref.shape == (B, C_OUT, L // 2)
    max_err = float(jnp.max(jnp.abs(out - ref)))
    assert jnp.allclose(out, ref, atol=1e-3, rtol=1e-3), f"mismatch vs reference: {max_err}"
    print("KERNEL_OK")
</pallas_src>

<mosaic_0001>
module attributes {stable_mosaic.version = 11 : i64} {
  func.func @_conv_bn_elu_down_kernel(%arg0: i32, %arg1: memref<1x4x32xf32, #tpu.memory_space<vmem>>, %arg2: memref<32x18xbf16, #tpu.memory_space<vmem>>, %arg3: memref<8x12xbf16, #tpu.memory_space<vmem>>, %arg4: memref<8x1xf32, #tpu.memory_space<vmem>>, %arg5: memref<1x8x16xf32, #tpu.memory_space<vmem>>) attributes {dimension_semantics = [#tpu.dimension_semantics<parallel>], iteration_bounds = array<i64: 2>, scalar_prefetch = 0 : i64, scratch_operands = 0 : i64, tpu.core_type = #tpu.core_type<tc>, window_params = [{transform_indices = @transform_0, window_bounds = array<i64: 1, 4, 32>}, {pipeline_mode = #tpu.pipeline_mode<synchronous>, transform_indices = @transform_1, window_bounds = array<i64: 32, 18>}, {pipeline_mode = #tpu.pipeline_mode<synchronous>, transform_indices = @transform_2, window_bounds = array<i64: 8, 12>}, {pipeline_mode = #tpu.pipeline_mode<synchronous>, transform_indices = @transform_3, window_bounds = array<i64: 8, 1>}, {transform_indices = @transform_4, window_bounds = array<i64: 1, 8, 16>}]} {
    %c0 = arith.constant 0 : index
    %c0_0 = arith.constant 0 : index
    %c0_1 = arith.constant 0 : index
    %0 = vector.load %arg1[%c0, %c0_0, %c0_1] : memref<1x4x32xf32, #tpu.memory_space<vmem>>, vector<1x4x32xf32>
    %1 = vector.shape_cast %0 : vector<1x4x32xf32> to vector<4x32xf32>
    %2 = arith.truncf %1 : vector<4x32xf32> to vector<4x32xbf16>
    %c0_2 = arith.constant 0 : index
    %c0_3 = arith.constant 0 : index
    %3 = vector.load %arg2[%c0_2, %c0_3] : memref<32x18xbf16, #tpu.memory_space<vmem>>, vector<32x18xbf16>
    %cst = arith.constant dense<0.000000e+00> : vector<4x18xf32>
    %4 = tpu.matmul %2, %3, %cst {dimension_numbers = #tpu.dot_dimension_numbers<[1], [0], [0], [1], [0, 0, 1, 1], [], []>} : vector<4x32xbf16>, vector<32x18xbf16>, vector<4x18xf32> -> vector<4x18xf32>
    %5 = arith.truncf %4 : vector<4x18xf32> to vector<4x18xbf16>
    %6 = vector.extract_strided_slice %5 {offsets = [0, 0], sizes = [4, 16], strides = [1, 1]} : vector<4x18xbf16> to vector<4x16xbf16>
    %7 = vector.extract_strided_slice %5 {offsets = [0, 1], sizes = [4, 16], strides = [1, 1]} : vector<4x18xbf16> to vector<4x16xbf16>
    %8 = vector.extract_strided_slice %5 {offsets = [0, 2], sizes = [4, 16], strides = [1, 1]} : vector<4x18xbf16> to vector<4x16xbf16>
    %9 = tpu.concatenate %6, %7, %8 in 0 : vector<4x16xbf16>, vector<4x16xbf16>, vector<4x16xbf16> -> vector<12x16xbf16>
    %c0_4 = arith.constant 0 : index
    %c0_5 = arith.constant 0 : index
    %10 = vector.load %arg3[%c0_4, %c0_5] : memref<8x12xbf16, #tpu.memory_space<vmem>>, vector<8x12xbf16>
    %cst_6 = arith.constant dense<0.000000e+00> : vector<8x16xf32>
    %11 = tpu.matmul %10, %9, %cst_6 {dimension_numbers = #tpu.dot_dimension_numbers<[1], [0], [0], [1], [0, 0, 1, 1], [], []>} : vector<8x12xbf16>, vector<12x16xbf16>, vector<8x16xf32> -> vector<8x16xf32>
    %c0_7 = arith.constant 0 : index
    %c0_8 = arith.constant 0 : index
    %12 = vector.load %arg4[%c0_7, %c0_8] : memref<8x1xf32, #tpu.memory_space<vmem>>, vector<8x1xf32>
    %13 = vector.broadcast %12 : vector<8x1xf32> to vector<8x16xf32>
    %14 = arith.addf %11, %13 : vector<8x16xf32>
    %cst_9 = arith.constant 0.000000e+00 : f32
    %15 = vector.broadcast %cst_9 : f32 to vector<8x16xf32>
    %16 = arith.cmpf ogt, %14, %15 : vector<8x16xf32>
    %cst_10 = arith.constant 0.000000e+00 : f32
    %17 = vector.broadcast %cst_10 : f32 to vector<8x16xf32>
    %18 = arith.minimumf %14, %17 : vector<8x16xf32>
    %19 = math.exp %18 : vector<8x16xf32>
    %cst_11 = arith.constant 1.000000e+00 : f32
    %20 = vector.broadcast %cst_11 : f32 to vector<8x16xf32>
    %21 = arith.subf %19, %20 : vector<8x16xf32>
    %22 = arith.select %16, %14, %21 : vector<8x16xi1>, vector<8x16xf32>
    %c0_12 = arith.constant 0 : index
    %c0_13 = arith.constant 0 : index
    %c0_14 = arith.constant 0 : index
    %23 = vector.load %arg5[%c0_12, %c0_13, %c0_14] : memref<1x8x16xf32, #tpu.memory_space<vmem>>, vector<1x8x16xf32>
    %24 = vector.shape_cast %23 : vector<1x8x16xf32> to vector<8x16xf32>
    %25 = vector.shape_cast %22 : vector<8x16xf32> to vector<1x8x16xf32>
    tpu.vector_store %arg5[%c0_12, %c0_13, %c0_14], %25 {strides = array<i32>} : memref<1x8x16xf32, #tpu.memory_space<vmem>>, vector<1x8x16xf32>,
    return
  }
  func.func @transform_0(%arg0: i32) -> (i32, i32, i32) {
    %c0_i32 = arith.constant 0 : i32
    %c0_i32_0 = arith.constant 0 : i32
    %c0_i32_1 = arith.constant 0 : i32
    return %arg0, %c0_i32, %c0_i32_0 : i32, i32, i32
  }
  func.func @transform_1(%arg0: i32) -> (i32, i32) {
    %c0_i32 = arith.constant 0 : i32
    %c0_i32_0 = arith.constant 0 : i32
    %c0_i32_1 = arith.constant 0 : i32
    return %c0_i32, %c0_i32_0 : i32, i32
  }
  func.func @transform_2(%arg0: i32) -> (i32, i32) {
    %c0_i32 = arith.constant 0 : i32
    %c0_i32_0 = arith.constant 0 : i32
    %c0_i32_1 = arith.constant 0 : i32
    return %c0_i32, %c0_i32_0 : i32, i32
  }
  func.func @transform_3(%arg0: i32) -> (i32, i32) {
    %c0_i32 = arith.constant 0 : i32
    %c0_i32_0 = arith.constant 0 : i32
    %c0_i32_1 = arith.constant 0 : i32
    return %c0_i32, %c0_i32_0 : i32, i32
  }
  func.func @transform_4(%arg0: i32) -> (i32, i32, i32) {
    %c0_i32 = arith.constant 0 : i32
    %c0_i32_0 = arith.constant 0 : i32
    %c0_i32_1 = arith.constant 0 : i32
    return %arg0, %c0_i32, %c0_i32_0 : i32, i32, i32
  }
}

</mosaic_0001>

<bundles_post_ra>
// kernel: tpu_custom_call.1
= control target key start
LH: loop header
LB: loop body
LE: loop exit
PB: predicated region body
PF: predicated region fallthrough
CT: control target
= control target key end

     0   :  { %9 = vsyncpa [#allocation3], 0  ;;  %s697_s0 = inlined_call_operand.vmem [shape: f32[2,4,32], index: 0, kind: input, shape index: {}]   ;;  %s698_s1 = inlined_call_operand.vmem [shape: bf16[32,18], index: 1, kind: input, shape index: {}]   ;;  %s699_s2 = inlined_call_operand.vmem [shape: bf16[8,12], index: 2, kind: input, shape index: {}]   ;;  %s700_s3 = inlined_call_operand.vmem [shape: f32[8,1], index: 3, kind: input, shape index: {}]   ;;  %s701_s4 = inlined_call_operand.hbm [shape: f32[2,8,16], index: 4, kind: output, shape index: {}]  }
   0x1   :  { %11 = vsyncpa [#allocation3 + $0x1], 0  ;;  %s585_s15 = smov 0   ;;  %s587_s16 = smov 0  }
   0x2   :  { %s589_s17 = smov 0   ;;  %s591_s18 = smov 0  }
   0x3 LB: > { %s606_s19 = sadd.s32 4294967295, %s552_s18   ;;  %s406_s20 = sadd.s32 4294967294, %s552_s18   ;;  %s552_s18 = sphi %s591_s18, %s707_s18   ;;  %s548_s17 = sphi %s589_s17, %s706_s17   ;;  %s544_s16 = sphi %s587_s16, %s705_s16   ;;  %s540_s15 = sphi %s585_s15, %s704_s15  }
   0x4   : > { %s610_s21 = sadd.s32 1, %s552_s18   ;;  %s113_s22 = sadd.s32 1, %s548_s17 }
   0x5   : > { %s110_s23 = ssub.s32 %s552_s18, %s610_s21  ;;  %p123_p0 = scmp.ne.s32.totalorder %s548_s17, %s544_s16 }
   0x6   : > { %p111_p1 = scmp.eq.s32.totalorder %s110_s23, 0  ;;  %p124_p2 = scmp.eq.s32.totalorder %s606_s19, 1 }
   0x7   : > { %p129_p3 = scmp.ne.s32.totalorder %s544_s16, %s540_s15  ;;  %p130_p4 = scmp.eq.s32.totalorder %s406_s20, 1 }
   0x8   : > { %s621_s24 = scalar_select %p111_p1, %s548_s17, %s113_s22  }
   0x9   : > { %p623_p5 = por %p124_p2, %p123_p0  ;;  %p627_p6 = por %p130_p4, %p129_p3 }
   0xa   : > { %p409_p7 = scmp.ge.s32.totalorder %s552_s18, 1  ;;  %p164_p8 = scmp.lt.s32.totalorder %s552_s18, 3 }
   0xc   : > { %p165_p9 = pnand %p409_p7, %p164_p8 }
   0xd   : > { %v486_v0 = vld [vmem:[%s698_s1] sm:$0xff] (!%p165_p9)   ;;  %v554_v1 = vmov (!%p165_p9), 0.0   ;;  %v487_v2 = vld [vmem:[%s698_s1 + $0x8] sm:$0xff] (!%p165_p9)   ;;  %vm555_vm0 = vmmov (!%p165_p9), 0   ;;  %p189_p10 = scmp.lt.s32.totalorder (!%p165_p9), %s606_s19, 1  ;;  %vm212_vm1 = vcmask (!%p165_p9), 261120  }
   0xe   : > { %168 = sbr.rel (%p165_p9) target bundleno = 614 (0x266), region = 36  ;;  %426 = vmatprep.subr.bf16.mxu0 (!%p165_p9), %v554_v1  ;;  %434 = vmatprep.subr.bf16.mxu1 (!%p165_p9), %v554_v1  ;;  %v272_v8 = vld [vmem:[%s700_s3] sm:$0xff] (!%p165_p9)  ;;  %v556_v10 = vmov (!%p165_p9), 0   ;;  %s557_s12 = smov (!%p165_p9), 127   ;;  %vm264_vm2 = vcmask (!%p165_p9), 1041408   ;;  %vm268_vm3 = vcmask (!%p165_p9), 1043456  }
   0xf   : > { %427 = vmatpush3.bf16.msra.mxu0 (!%p165_p9), %v486_v0  ;;  %430 = vmatprep.mubr.msk.bf16.mxu0 (!%p165_p9), %vm555_vm0, %v554_v1  ;;  %s558_s13 = smov (!%p165_p9), 126   ;;  %vm282_vm4 = vcmask (!%p165_p9), 1045504   ;;  %v271_v19 = vld [vmem:[%s699_s2] sm:$0xf] (!%p165_p9)  ;;  %vm278_vm5 = vcmask (!%p165_p9), 97280   ;;  %s186_s22 = sand.u32 (!%p165_p9), 1, %s544_s16  }
  0x10   : > { %428 = vmatprep.subr.bf16.mxu0 (!%p165_p9), %v554_v1  ;;  %436 = vmatprep.mubr.msk.bf16.mxu1 (!%p165_p9), %vm555_vm0, %v554_v1  ;;  %s410_s23 = sshll.u32 (!%p165_p9), %s186_s22, 3  ;;  %s418_s27 = sshll.u32 (!%p165_p9), %s606_s19, 7  ;;  %vm331_vm6 = vcmask (!%p165_p9), 130048  }
  0x11   : > { %484 = vset.pattern.permute.xlu1 (!%p165_p9), %v556_v10  ;;  %485 = vset.pattern.permute.xlu0 (!%p165_p9), %v556_v10  ;;  %s188_s28 = scalar_lea.vmem (!%p165_p9), [#allocation2], %s410_s23  ;;  %s334_s7 = scalar_lea.sflag (!%p165_p9), [#allocation3], %s186_s22 }
  0x12   : > { %275 = vperm.xlu1 (!%p165_p9), %484, %v272_v8   ;;  %s347_s29 = sshll.u32 (!%p165_p9), %s188_s28, 4  ;;  %s559_s8 = smov (!%p165_p9), [#allocation2]   ;;  %s657_s29 = int_to_ptr.vmem [resolvable:$true] %s347_s29 }
  0x13   : > { %429 = vmatpush3.bf16.msra.mxu0 (!%p165_p9), %v487_v2 }
  0x15   : > { %s190_s5 = scalar_select %p189_p10, %s606_s19, 1 }
  0x16   : > { %s490_s19 = scalar_lea.vmem %s657_s29, 128 }
  0x17   : > { %s411_s6 = sshll.u32 %s190_s5, 2  ;;  %p491_p11 = scmp.ne.s32.totalorder %s657_s29, %s490_s19 }
  0x18   : > { %s192_s9 = scalar_lea.vmem %s697_s0, %s411_s6  ;;  %s655_s6 = scalar_lea.hbm %s701_s4, %s418_s27 }
  0x19   : > { %v194_v3 = vld [vmem:[%s192_s9] sm:$0xf]  ;;  %p492_p12 = pnand %p491_p11, %p623_p5  ;;  %s494_s9 = sshll.u32 %s559_s8, 4  ;;  %s495_s9 = int_to_ptr.vmem [resolvable:$false] %s494_s9 }
  0x1a   : > { %v195_v4 = vpack.c.bf16 %v194_v3, %v194_v3  ;;  %s496_s10 = scalar_lea.vmem %s495_s9, 256  ;;  %p497_p0 = scmp.lt.s32.totalorder %s657_s29, %s495_s9 }
  0x1b   : > { %p493_p13 = pneg %p492_p12  ;;  %p498_p1 = scmp.lt.s32.totalorder %s496_s10, %s490_s19 }
  0x1c   : > { %431 = vmatmul.mubr.msk.bf16.vlgmr.msra.gmra.mrb[0].mxu0 %vm212_vm1, %v195_v4 }
  0x1d   : > { %p499_p2 = por %p498_p1, %p497_p0 }
  0x1f   : > { %p500_p3 = pnand %p499_p2, %p493_p13 }
  0x91   : > { %v276_v20 = vpop.permute.xlu1 %275 }
  0xef   : > { %v250_v5 = vpop.f32.mrb[0].mxu0 }
  0xf0   : > { %v256_v6 = vpack.c.bf16 %v250_v5, %v250_v5  ;;  %v432_v7 = vpop.f32.mrb[1].mxu0 }
  0xf1   : > { %v253_v9 = vpop.f32.mrb[2].mxu0 }
  0xf2   : > { %v433_v11 = vpop.f32.mrb[3].mxu0  ;;  %v258_v12 = vrot.slane %v256_v6, 6  ;;  %v261_v13 = vrot.slane %v256_v6, 4 }
  0xf4   : > { %259 = vrot.lane.b32.xlu0 %v258_v12, %s557_s12 }
  0xf8   : > { %262 = vrot.lane.b32.xlu0 %v261_v13, %s558_s13 }
 0x166   : > { %v260_v14 = vpop.permute.xlu0 %259 }
 0x167   : > { %v267_v15 = vsel %vm264_vm2, %v256_v6, %v260_v14 }
 0x16a   : > { %v263_v16 = vpop.permute.xlu0 %262 }
 0x16b   : > { %v270_v17 = vsel %vm268_vm3, %v267_v15, %v263_v16 }
 0x16c   : > { %v283_v18 = vsel %vm282_vm4, %v270_v17, 0 }
 0x16d   : > { %435 = vmatpush3.bf16.msra.mxu1 %v283_v18 }
 0x170   : > { %437 = vmatmul.mubr.msk.bf16.vlgmr.msra.gmra.mrb[0].mxu1 %vm278_vm5, %v271_v19 }
 0x243   : > { %v319_v21 = vpop.f32.mrb[0].mxu1 }
 0x244   : > { %v320_v22 = vadd.f32 %v319_v21, %v276_v20  ;;  %v438_v23 = vpop.f32.mrb[1].mxu1 }
 0x245   : > { %v322_v24 = vpop.f32.mrb[2].mxu1 }
 0x246   : > { %v326_v25 = vmin.f32 %v320_v22, 0.0  ;;  %v439_v26 = vpop.f32.mrb[3].mxu1  ;;  %vm325_vm7 = vcmp.gt.f32.partialorder %v320_v22, 0.0 }
 0x248   : > { %v327_v27 = vmul.f32 1.442695, %v326_v25 }
 0x24a   : > { %488 = vpow2.f32 %v327_v27 }
 0x254   : > { %v489_v28 = vpop.eup %488 }
 0x255   : > { %v416_v29 = vadd.f32 -1.0, %v489_v28 }
 0x257   : > { %v330_v30 = vsel %vm325_vm7, %v320_v22, %v416_v29 }
 0x258   : > { %332 = vst.msk [vmem:[%s188_s28] sm:$0xff] %vm331_vm6, %v330_v30 }
 0x259   : > { %503 = shalt.err (!%p500_p3)
}
 0x25a   : > { %s504_s11 = scalar_lea.hbm %s655_s6, 128  ;;  %s508_s14 = scalar_lea.hbm %s701_s4, 256 }
 0x25b   : > { %p505_p4 = scmp.ne.s32.totalorder %s655_s6, %s504_s11  ;;  %p509_p9 = scmp.lt.u32.totalorder %s655_s6, %s701_s4 }
 0x25c   : > { %p510_p10 = scmp.lt.u32.totalorder %s508_s14, %s504_s11  ;;  %p512_p12 = scmp.lt.u32.totalorder %s504_s11, %s655_s6 }
 0x25d   : > { %p506_p7 = pnand %p505_p4, %p623_p5 }
 0x25e   : > { %p511_p11 = por %p510_p10, %p509_p9 }
 0x25f   : > { %p507_p8 = pneg %p506_p7 }
 0x260   : > { %p513_p13 = por %p512_p12, %p511_p11 }
 0x262   : > { %p514_p0 = pnand %p513_p13, %p507_p8 }
 0x264   : > { %517 = shalt.err (!%p514_p0)
}
 0x265   : > { %440 = dma.vmem_to_hbm [thread:$0]  (%p623_p5), %s657_s29, 128, %s655_s6, %s334_s7  }
 0x266 PF: > { %p446_p1 = scmp.ge.s32.totalorder %s552_s18, 2  ;;  %s359_s23 = sand.u32 1, %s540_s15  }
 0x267   : > { %s360_s27 = scalar_lea.sflag [#allocation3], %s359_s23 }
 0x268   : > { %p443_p2 = pnand %p446_p1, %p627_p6 }
 0x26a   : > { %535 = dma.done.wait (!%p443_p2), %s360_s27, 128  }
 0x26b   : > { %537 = vsyncadd (!%p443_p2), %s360_s27, 4294967168  ;;  %p14_p3 = scmp.ge.s32.totalorder %s610_s21, 4   ;;  %s704_s15 = smov %s544_s16 }
 0x26c   : > { %s705_s16 = smov %s548_s17  ;;  %s706_s17 = smov %s621_s24 }
 0x26d   : > { %s707_s18 = smov %s610_s21  ;;  %16 = sbr.rel (!%p14_p3) target bundleno = 3 (0x3), region = 71 }
 0x274   :  { %365 = vsyncpa [#allocation3], 1 }
 0x275   :  { %367 = vsyncpa [#allocation3 + $0x1], 1 }

</bundles_post_ra>
